<compile_context>
chip_gen: v7x
topology: tpu7x:2x2x1
jax: 0.10.0
libtpu: 0.0.40
codegen_flags: <defaults>
</compile_context>

<pallas_src>
import jax
import jax.numpy as jnp
from jax.experimental import pallas as pl
from jax.experimental.pallas import tpu as pltpu


def _mish_kernel(x_ref, o_ref):
    # Mish: y = x * tanh(softplus(x)), one exp per element.
    # With a = exp(min(x,0)), b = exp(-max(x,0))  (one of a,b is exactly 1):
    #   tanh(log1p(exp(x))) = (a^2 + 2ab) / (a^2 + 2ab + 2b^2)
    # Denominator den = a^2 + 2ab + 2b^2 is always in [1, 5], so an approx
    # reciprocal + one Newton step (rel err ~2^-24) is safe and exact enough.
    x = x_ref[...].astype(jnp.float32)
    t = jnp.exp(-jnp.abs(x))                 # EUP
    pos = x >= 0.0
    a = jnp.where(pos, 1.0, t)
    b = jnp.where(pos, t, 1.0)
    tb = b + b                               # 2*b, reused (saves a vmul)
    num = a * (a + tb)
    den = num + tb * b
    r = pl.reciprocal(den, approx=True)      # EUP slot (free-ish)
    r = r * (2.0 - den * r)                  # one Newton step -> ~6e-8 rel err
    o_ref[...] = (x * (num * r)).astype(o_ref.dtype)


def _vmem_budget():
    """(block_target_bytes, vmem_limit_bytes) per TPU generation."""
    try:
        cap = pltpu.get_tpu_info().vmem_capacity_bytes
    except Exception:
        cap = 64 << 20                       # conservative default (v7x-like)
    if cap >= (100 << 20):                   # v5e / v6e: 128 MiB physical VMEM
        return 4 << 20, 48 << 20
    return 2 << 20, 32 << 20                 # v7x: 64 MiB physical, 32 MiB scoped


def _mish_jnp(x):
    xf = x.astype(jnp.float32)
    return (xf * jnp.tanh(jax.nn.softplus(xf))).astype(x.dtype)


def _mish_2d(x_flat, n, lane, dtype):
    """Run the Pallas kernel on a flat array whose size n is a multiple of lane."""
    rows = n // lane
    x2d = x_flat.reshape(rows, lane)
    itemsize = jnp.dtype(dtype).itemsize

    block_bytes, vmem_limit = _vmem_budget()
    target_rows = max(32, block_bytes // (lane * itemsize))

    if rows < 64:
        # Truly tiny: whole-array block (pipeline overlap not worth 0.35us/step).
        tile_rows = rows
    else:
        # >= ~8 grid steps: DMA/compute overlap + work for both v7x TensorCores.
        tr = min(target_rows, max(8, rows // 8))
        align = 32 if tr >= 32 else 8        # 32 keeps bf16/fp8 packed tiles aligned
        tile_rows = max(align, (tr // align) * align)

    grid = (pl.cdiv(rows, tile_rows),)

    cost = pl.CostEstimate(
        flops=12 * n,
        transcendentals=n,                   # one exp per element
        bytes_accessed=2 * n * itemsize,
    )

    out2d = pl.pallas_call(
        _mish_kernel,
        out_shape=jax.ShapeDtypeStruct((rows, lane), dtype),
        grid_spec=pltpu.PrefetchScalarGridSpec(
            num_scalar_prefetch=0,
            grid=grid,
            in_specs=[pl.BlockSpec((tile_rows, lane), lambda i: (i, 0))],
            out_specs=pl.BlockSpec((tile_rows, lane), lambda i: (i, 0)),
        ),
        compiler_params=pltpu.CompilerParams(
            dimension_semantics=("parallel",),
            vmem_limit_bytes=vmem_limit,
        ),
        cost_estimate=cost,
    )(x2d)
    return out2d.reshape(-1)


def mish(x: jax.Array) -> jax.Array:
    """Elementwise Mish. Accepts any shape (e.g. NCHW), returns same shape/dtype."""
    orig_shape = x.shape
    n = x.size
    if n == 0:
        return x

    x_flat = jnp.ravel(x)

    # Widest lane with full sublane occupancy (rows >= 8); else widest divisor.
    lane = None
    for cand in (1024, 512, 256, 128):
        if n % cand == 0 and n // cand >= 8:
            lane = cand
            break
    if lane is None:
        for cand in (1024, 512, 256, 128):
            if n % cand == 0:
                lane = cand
                break

    if lane is not None:
        out_flat = _mish_2d(x_flat, n, lane, x.dtype)
    else:
        # n not a multiple of 128: run the aligned bulk through the kernel and
        # the tiny (<lane elem) tail in plain jnp -- no whole-array pad+slice.
        lane = 128
        for cand in (1024, 512, 256):
            if n // cand >= 8:
                lane = cand
                break
        n_bulk = (n // lane) * lane
        if n_bulk == 0:
            out_flat = _mish_jnp(x_flat)
        else:
            bulk = _mish_2d(x_flat[:n_bulk], n_bulk, lane, x.dtype)
            tail = _mish_jnp(x_flat[n_bulk:])
            out_flat = jnp.concatenate([bulk, tail])

    return out_flat.reshape(orig_shape)


def _mish_ref(x):
    xf = x.astype(jnp.float32)
    return (xf * jnp.tanh(jnp.log1p(jnp.exp(xf)))).astype(x.dtype)


if __name__ == "__main__":
    key = jax.random.PRNGKey(0)
    x = jax.random.normal(key, (2, 4, 16, 16), dtype=jnp.float32)  # NCHW

    y = mish(x)
    jax.block_until_ready(y)

    y_ref = _mish_ref(x)
    assert y.shape == x.shape and y.dtype == x.dtype
    assert jnp.allclose(y, y_ref, atol=1e-5, rtol=1e-5), "mismatch vs reference"

    print("KERNEL_OK")
</pallas_src>

<mosaic_0001>
module attributes {stable_mosaic.version = 11 : i64} {
  func.func @_mish_kernel(%arg0: i32, %arg1: memref<8x256xf32, #tpu.memory_space<vmem>>, %arg2: memref<8x256xf32, #tpu.memory_space<vmem>>) attributes {dimension_semantics = [#tpu.dimension_semantics<parallel>], iteration_bounds = array<i64: 1>, scalar_prefetch = 0 : i64, scratch_operands = 0 : i64, tpu.core_type = #tpu.core_type<tc>, window_params = [{transform_indices = @transform_0, window_bounds = array<i64: 8, 256>}, {transform_indices = @transform_1, window_bounds = array<i64: 8, 256>}]} {
    %c0 = arith.constant 0 : index
    %c0_0 = arith.constant 0 : index
    %0 = vector.load %arg1[%c0, %c0_0] : memref<8x256xf32, #tpu.memory_space<vmem>>, vector<8x256xf32>
    %1 = math.absf %0 : vector<8x256xf32>
    %cst = arith.constant 0.000000e+00 : f32
    %2 = vector.broadcast %cst : f32 to vector<8x256xf32>
    %3 = arith.subf %2, %1 : vector<8x256xf32>
    %4 = math.exp %3 : vector<8x256xf32>
    %cst_1 = arith.constant 0.000000e+00 : f32
    %5 = vector.broadcast %cst_1 : f32 to vector<8x256xf32>
    %6 = arith.cmpf oge, %0, %5 : vector<8x256xf32>
    %cst_2 = arith.constant 1.000000e+00 : f32
    %7 = vector.broadcast %cst_2 : f32 to vector<8x256xf32>
    %8 = arith.select %6, %7, %4 : vector<8x256xi1>, vector<8x256xf32>
    %cst_3 = arith.constant 1.000000e+00 : f32
    %9 = vector.broadcast %cst_3 : f32 to vector<8x256xf32>
    %10 = arith.select %6, %4, %9 : vector<8x256xi1>, vector<8x256xf32>
    %11 = arith.addf %10, %10 : vector<8x256xf32>
    %12 = arith.addf %8, %11 : vector<8x256xf32>
    %13 = arith.mulf %8, %12 : vector<8x256xf32>
    %14 = arith.mulf %11, %10 : vector<8x256xf32>
    %15 = arith.addf %13, %14 : vector<8x256xf32>
    %16 = tpu.reciprocal %15 {approx = true} : vector<8x256xf32> -> vector<8x256xf32>
    %17 = arith.mulf %15, %16 : vector<8x256xf32>
    %cst_4 = arith.constant 2.000000e+00 : f32
    %18 = vector.broadcast %cst_4 : f32 to vector<8x256xf32>
    %19 = arith.subf %18, %17 : vector<8x256xf32>
    %20 = arith.mulf %16, %19 : vector<8x256xf32>
    %21 = arith.mulf %13, %20 : vector<8x256xf32>
    %22 = arith.mulf %0, %21 : vector<8x256xf32>
    %c0_5 = arith.constant 0 : index
    %c0_6 = arith.constant 0 : index
    %23 = vector.load %arg2[%c0_5, %c0_6] : memref<8x256xf32, #tpu.memory_space<vmem>>, vector<8x256xf32>
    tpu.vector_store %arg2[%c0_5, %c0_6], %22 {strides = array<i32>} : memref<8x256xf32, #tpu.memory_space<vmem>>, vector<8x256xf32>,
    return
  }
  func.func @transform_0(%arg0: i32) -> (i32, i32) {
    %c0_i32 = arith.constant 0 : i32
    %c0_i32_0 = arith.constant 0 : i32
    return %arg0, %c0_i32 : i32, i32
  }
  func.func @transform_1(%arg0: i32) -> (i32, i32) {
    %c0_i32 = arith.constant 0 : i32
    %c0_i32_0 = arith.constant 0 : i32
    return %arg0, %c0_i32 : i32, i32
  }
}

</mosaic_0001>

<bundles_post_ra>
// kernel: tpu_custom_call.1
= control target key start
LH: loop header
LB: loop body
LE: loop exit
PB: predicated region body
PF: predicated region fallthrough
CT: control target
= control target key end

     0   :  { %6 = vsyncpa [#allocation3], 0  ;;  %s170_s0 = inlined_call_operand.hbm [shape: f32[8,256], index: 0, kind: input, shape index: {}]   ;;  %s171_s1 = inlined_call_operand.hbm [shape: f32[8,256], index: 1, kind: output, shape index: {}]  }
   0x1   :  { %7 = vsyncpa [#allocation4], 0  ;;  %s134_s6 = smov [#allocation2]   ;;  %s86_s10 = scalar_lea.hbm %s170_s0, 256 }
   0x2   :  { %s14_s7 = sshll.u32 %s134_s6, 4  ;;  %p87_p0 = scmp.ne.s32.totalorder %s170_s0, %s86_s10  ;;  %s15_s7 = int_to_ptr.vmem [resolvable:$true] %s14_s7 }
   0x3   :  { %p90_p1 = scmp.lt.u32.totalorder %s86_s10, %s170_s0 }
   0x5   :  { %p92_p2 = pnand %p90_p1, %p87_p0 }
   0x7   :  { %95 = shalt.err (!%p92_p2)
}
   0x8   :  { %s96_s15 = scalar_lea.vmem %s15_s7, 256  ;;  %p101_p4 = scmp.lt.s32.totalorder %s15_s7, %s15_s7 }
   0x9   :  { %p97_p3 = scmp.ne.s32.totalorder %s15_s7, %s96_s15  ;;  %p102_p5 = scmp.lt.s32.totalorder %s96_s15, %s96_s15 }
   0xb   :  { %p103_p6 = por %p102_p5, %p101_p4 }
   0xd   :  { %p104_p7 = pnand %p103_p6, %p97_p3 }
   0xf   :  { %107 = shalt.err (!%p104_p7)
}
  0x10   :  { %17 = dma.hbm_to_vmem [thread:$0]  %s170_s0, 256, %s15_s7, [#allocation3]  }
  0x11   :  { %130 = dma.done.wait [#allocation3], 256  }
  0x12   :  { %131 = vsyncadd [#allocation3], 4294967040  ;;  %v21_v0 = vld [vmem:[#allocation2] sm:$0xff]  ;;  %v22_v1 = vld [vmem:[#allocation2 + $0x8] sm:$0xff]  ;;  %s135_s0 = smov [#allocation5]  }
  0x13   :  { %v23_v2 = vand.u32 2147483647, %v21_v0  ;;  %v24_v3 = vand.u32 2147483647, %v22_v1  ;;  %vm31_vm0 = vcmp.ge.f32.partialorder %v21_v0, 0.0  ;;  %vm32_vm1 = vcmp.ge.f32.partialorder %v22_v1, 0.0 }
  0x14   :  { %s67_s18 = sshll.u32 %s135_s0, 4  ;;  %s68_s18 = int_to_ptr.vmem [resolvable:$true] %s67_s18 }
  0x15   :  { %v25_v4 = vsub.f32 0.0, %v23_v2  ;;  %v26_v5 = vsub.f32 0.0, %v24_v3  ;;  %s108_s19 = scalar_lea.vmem %s68_s18, 256  ;;  %p113_p9 = scmp.lt.s32.totalorder %s68_s18, %s68_s18 }
  0x16   :  { %p109_p8 = scmp.ne.s32.totalorder %s68_s18, %s108_s19  ;;  %p114_p10 = scmp.lt.s32.totalorder %s108_s19, %s108_s19 }
  0x17   :  { %v27_v6 = vmul.f32 1.442695, %v25_v4  ;;  %v29_v7 = vmul.f32 1.442695, %v26_v5 }
  0x18   :  { %p115_p11 = por %p114_p10, %p113_p9 }
  0x19   :  { %78 = vpow2.f32 %v27_v6 }
  0x1a   :  { %80 = vpow2.f32 %v29_v7  ;;  %p116_p12 = pnand %p115_p11, %p109_p8 }
  0x23   :  { %v79_v8 = vpop.eup %78 }
  0x24   :  { %v81_v9 = vpop.eup %80  ;;  %v33_v10 = vsel %vm31_vm0, 1.0, %v79_v8  ;;  %v35_v11 = vsel %vm31_vm0, %v79_v8, 1.0 }
  0x25   :  { %v37_v12 = vadd.f32 %v35_v11, %v35_v11  ;;  %v34_v13 = vsel %vm32_vm1, 1.0, %v81_v9  ;;  %v36_v14 = vsel %vm32_vm1, %v81_v9, 1.0 }
  0x26   :  { %v38_v15 = vadd.f32 %v36_v14, %v36_v14 }
  0x27   :  { %v39_v16 = vadd.f32 %v37_v12, %v33_v10  ;;  %v43_v17 = vmul.f32 %v37_v12, %v35_v11 }
  0x28   :  { %v40_v18 = vadd.f32 %v38_v15, %v34_v13  ;;  %v44_v19 = vmul.f32 %v38_v15, %v36_v14 }
  0x29   :  { %v41_v20 = vmul.f32 %v39_v16, %v33_v10 }
  0x2a   :  { %v42_v21 = vmul.f32 %v40_v18, %v34_v13 }
  0x2b   :  { %v45_v22 = vadd.f32 %v43_v17, %v41_v20 }
  0x2c   :  { %v46_v23 = vadd.f32 %v44_v19, %v42_v21 }
  0x2d   :  { %82 = vrcp.f32 %v45_v22 }
  0x2e   :  { %84 = vrcp.f32 %v46_v23 }
  0x37   :  { %v83_v24 = vpop.eup %82 }
  0x38   :  { %v85_v25 = vpop.eup %84  ;;  %v49_v26 = vmul.f32 %v83_v24, %v45_v22 }
  0x39   :  { %v50_v27 = vmul.f32 %v85_v25, %v46_v23 }
  0x3a   :  { %v51_v28 = vsub.f32 2.0, %v49_v26 }
  0x3b   :  { %v52_v29 = vsub.f32 2.0, %v50_v27 }
  0x3c   :  { %v53_v30 = vmul.f32 %v83_v24, %v51_v28 }
  0x3d   :  { %v54_v31 = vmul.f32 %v85_v25, %v52_v29 }
  0x3e   :  { %v55_v32 = vmul.f32 %v53_v30, %v41_v20 }
  0x3f   :  { %v56_v33 = vmul.f32 %v54_v31, %v42_v21 }
  0x40   :  { %v57_v34 = vmul.f32 %v55_v32, %v21_v0 }
  0x41   :  { %v58_v35 = vmul.f32 %v56_v33, %v22_v1 }
  0x42   :  { %59 = vst [vmem:[#allocation5] sm:$0xff] %v57_v34 }
  0x43   :  { %60 = vst [vmem:[#allocation5 + $0x8] sm:$0xff] %v58_v35 }
  0x44   :  { %119 = shalt.err (!%p116_p12)
}
  0x45   :  { %s120_s22 = scalar_lea.hbm %s171_s1, 256 }
  0x46   :  { %p121_p13 = scmp.ne.s32.totalorder %s171_s1, %s120_s22  ;;  %p124_p0 = scmp.lt.u32.totalorder %s120_s22, %s171_s1 }
  0x48   :  { %p126_p1 = pnand %p124_p0, %p121_p13 }
  0x4a   :  { %129 = shalt.err (!%p126_p1)
}
  0x4b   :  { %70 = dma.vmem_to_hbm [thread:$0]  %s68_s18, 256, %s171_s1, [#allocation4]  }
  0x4c   :  { %132 = dma.done.wait [#allocation4], 256  }
  0x4d   :  { %133 = vsyncadd [#allocation4], 4294967040 }
  0x4e   :  { %74 = vsyncpa [#allocation3], 1 }
  0x4f   :  { %75 = vsyncpa [#allocation4], 1 }

</bundles_post_ra>
